<compile_context>
chip_gen: v6e
topology: v6e:2x2x1
jax: 0.10.0
libtpu: 0.0.40
codegen_flags: <defaults>
</compile_context>

<pallas_src>
import math
import jax
import jax.numpy as jnp
from jax.experimental import pallas as pl
from jax.experimental.pallas import tpu as pltpu

NUM_HEADS = 2
LN_EPS = 1e-12
PAD_OUT = 128   # lane-dense classifier width; real logits live in columns [:3]


def _layernorm(x, gamma, beta):
    mu = jnp.mean(x, axis=-1, keepdims=True)
    var = jnp.mean((x - mu) ** 2, axis=-1, keepdims=True)
    return (x - mu) * jax.lax.rsqrt(var + LN_EPS) * gamma + beta


def _mm(a_f32, w_bf16):
    """bf16-operand MXU matmul with f32 accumulation."""
    return jnp.dot(a_f32.astype(jnp.bfloat16), w_bf16,
                   preferred_element_type=jnp.float32)


def bert_classifier_kernel(
    x_ref, mask_ref,
    g0_ref, b0_ref,
    wqkv_ref, bqkv_ref, wo_ref, bo_ref,
    g1_ref, be1_ref,
    w1_ref, b1_ref, w2_ref, b2_ref,
    g2_ref, be2_ref,
    wc_ref, bc_ref,
    out_ref,
):
    x_flat = x_ref[...]                       # (B*S, H) f32 summed embeddings
    mbias = mask_ref[...]                     # (B, 1, S) f32 additive bias (0 / -1e9)

    N, H = x_flat.shape
    B, _, S = mask_ref.shape
    DH = H // NUM_HEADS
    scale = 1.0 / math.sqrt(DH)

    # embedding layernorm (f32 statistics)
    x = _layernorm(x_flat, g0_ref[...], b0_ref[...])

    # fused QKV projection: one (N,H)@(H,3H) MXU matmul, bf16 in / f32 acc
    qkv = _mm(x, wqkv_ref[...]) + bqkv_ref[...]              # (N, 3H) f32
    q = qkv[:, 0:H].reshape(B, S, H)
    k = qkv[:, H:2 * H].reshape(B, S, H)
    v = qkv[:, 2 * H:3 * H].reshape(B, S, H)

    wo = wo_ref[...]                                          # (H, H) bf16
    attn = jnp.zeros((N, H), jnp.float32)
    for h in range(NUM_HEADS):                                # static, NUM_HEADS=2
        sl = slice(h * DH, (h + 1) * DH)
        qh = q[..., sl].astype(jnp.bfloat16)                  # (B, S, DH)
        kh = k[..., sl].astype(jnp.bfloat16)
        vh = v[..., sl].astype(jnp.bfloat16)
        # batched scores over the whole batch; mask/softmax stay in f32
        s_h = jnp.einsum('bqd,bkd->bqk', qh, kh,
                         preferred_element_type=jnp.float32) * scale + mbias
        m = jnp.max(s_h, axis=-1, keepdims=True)
        p = jnp.exp(s_h - m)
        p = p * pl.reciprocal(jnp.sum(p, axis=-1, keepdims=True), approx=True)
        ctx = jnp.einsum('bqk,bkd->bqd', p.astype(jnp.bfloat16), vh,
                         preferred_element_type=jnp.float32)  # (B, S, DH)
        # fold head back through its W_O row-slice: no lane-axis concatenate
        attn = attn + _mm(ctx.reshape(N, DH), wo[sl, :])
    attn = attn + bo_ref[...]

    h1 = _layernorm(x + attn, g1_ref[...], be1_ref[...])

    # feed-forward (bf16 operands, f32 acc; GELU in f32)
    f = _mm(h1, w1_ref[...]) + b1_ref[...]
    f = jax.nn.gelu(f, approximate=True)
    f = _mm(f, w2_ref[...]) + b2_ref[...]
    h2 = _layernorm(h1 + f, g2_ref[...], be2_ref[...])

    # nn.Dropout(0.1): identity in eval mode
    # TODO(synk): training-mode dropout (pltpu.prng_random_bits mask) not applied.

    # classifier: lane-dense padded-to-128 output; logits are columns [:3]
    out_ref[...] = _mm(h2, wc_ref[...]) + bc_ref[...]


WEIGHT_NAMES = ['g0', 'b0', 'wqkv', 'bqkv', 'wo', 'bo', 'g1', 'be1',
                'w1', 'b1', 'w2', 'b2', 'g2', 'be2', 'wc_pad', 'bc_pad']


def init_params(key, vocab=101, type_vocab=2, max_pos=64, H=32, F=64):
    ks = jax.random.split(key, 10)
    nrm = lambda k, shape: jax.random.normal(k, shape, jnp.float32) * 0.02
    ones = lambda n: jnp.ones((1, n), jnp.float32)
    zeros = lambda n: jnp.zeros((1, n), jnp.float32)
    wq, wk, wv = nrm(ks[3], (H, H)), nrm(ks[4], (H, H)), nrm(ks[5], (H, H))
    wc = nrm(ks[9], (H, 3))
    return dict(
        word_emb=nrm(ks[0], (vocab, H)),
        type_emb=nrm(ks[1], (type_vocab, H)),
        pos_emb=nrm(ks[2], (max_pos, H)),
        g0=ones(H), b0=zeros(H),
        # fused QKV weight (bf16 MXU operand), f32 bias
        wqkv=jnp.concatenate([wq, wk, wv], axis=1).astype(jnp.bfloat16),
        bqkv=jnp.zeros((1, 3 * H), jnp.float32),
        wo=nrm(ks[6], (H, H)).astype(jnp.bfloat16), bo=zeros(H),
        g1=ones(H), be1=zeros(H),
        w1=nrm(ks[7], (H, F)).astype(jnp.bfloat16), b1=zeros(F),
        w2=nrm(ks[8], (F, H)).astype(jnp.bfloat16), b2=zeros(H),
        g2=ones(H), be2=zeros(H),
        # classifier zero-padded to 128 lanes (lane-dense stores)
        wc_pad=jnp.pad(wc, ((0, 0), (0, PAD_OUT - 3))).astype(jnp.bfloat16),
        bc_pad=jnp.zeros((1, PAD_OUT), jnp.float32),
    )


def big_model_forward(params, tokens, token_type_ids, attention_mask):
    B, S = tokens.shape
    H = params['wqkv'].shape[0]
    N = B * S

    # embedding lookup (glue, plain JAX)
    pos = jnp.arange(S)
    x = (params['word_emb'][tokens]
         + params['type_emb'][token_type_ids]
         + params['pos_emb'][pos][None, :, :]).astype(jnp.float32)       # (B,S,H)
    x_flat = x.reshape(N, H)                                             # (B*S,H)
    mask_bias = ((1.0 - attention_mask.astype(jnp.float32)) * -1e9
                 ).reshape(B, 1, S)                                      # (B,1,S)

    weights = [params[n] for n in WEIGHT_NAMES]
    in_specs = (
        [pl.BlockSpec((N, H), lambda i: (0, 0)),        # all activations, one step
         pl.BlockSpec((B, 1, S), lambda i: (0, 0, 0))]  # mask bias
        + [pl.BlockSpec(w.shape, lambda i: (0, 0)) for w in weights]     # weights
    )

    out = pl.pallas_call(
        bert_classifier_kernel,
        out_shape=jax.ShapeDtypeStruct((N, PAD_OUT), jnp.float32),
        grid_spec=pltpu.PrefetchScalarGridSpec(
            num_scalar_prefetch=0,
            grid=(1,),                                   # whole batch in one step
            in_specs=in_specs,
            out_specs=pl.BlockSpec((N, PAD_OUT), lambda i: (0, 0)),
        ),
        compiler_params=pltpu.CompilerParams(
            dimension_semantics=("parallel",)),
    )(x_flat, mask_bias, *weights)
    return out.reshape(B, S, PAD_OUT)[..., :3]


def big_model_reference(params, tokens, token_type_ids, attention_mask):
    """Pure-JAX reference with identical math (bf16 matmul operands, f32 acc)."""
    B, S = tokens.shape
    H = params['wqkv'].shape[0]
    DH = H // NUM_HEADS
    pos = jnp.arange(S)
    x = (params['word_emb'][tokens] + params['type_emb'][token_type_ids]
         + params['pos_emb'][pos][None, :, :]).astype(jnp.float32)
    mbias = ((1.0 - attention_mask.astype(jnp.float32)) * -1e9)[:, None, :]

    x = _layernorm(x, params['g0'], params['b0'])
    qkv = _mm(x, params['wqkv']) + params['bqkv']                         # (B,S,3H)
    q, k, v = qkv[..., :H], qkv[..., H:2 * H], qkv[..., 2 * H:]
    attn = jnp.zeros_like(x)
    for h in range(NUM_HEADS):
        sl = slice(h * DH, (h + 1) * DH)
        s = jnp.einsum('bqd,bkd->bqk',
                       q[..., sl].astype(jnp.bfloat16),
                       k[..., sl].astype(jnp.bfloat16),
                       preferred_element_type=jnp.float32) / math.sqrt(DH) + mbias
        p = jax.nn.softmax(s, axis=-1)
        ctx = jnp.einsum('bqk,bkd->bqd', p.astype(jnp.bfloat16),
                         v[..., sl].astype(jnp.bfloat16),
                         preferred_element_type=jnp.float32)
        attn = attn + _mm(ctx, params['wo'][sl, :])
    attn = attn + params['bo']
    h1 = _layernorm(x + attn, params['g1'], params['be1'])
    f = jax.nn.gelu(_mm(h1, params['w1']) + params['b1'], approximate=True)
    f = _mm(f, params['w2']) + params['b2']
    h2 = _layernorm(h1 + f, params['g2'], params['be2'])
    logits = _mm(h2, params['wc_pad']) + params['bc_pad']
    return logits[..., :3]


if __name__ == "__main__":
    key = jax.random.PRNGKey(0)
    kp, kt = jax.random.split(key)

    B, S, H, VOCAB = 2, 8, 32, 101
    params = init_params(kp, vocab=VOCAB, H=H)

    tokens = jax.random.randint(kt, (B, S), 0, VOCAB, dtype=jnp.int32)
    token_type_ids = jnp.zeros((B, S), dtype=jnp.int32)
    attention_mask = jnp.ones((B, S), dtype=jnp.int32)
    attention_mask = attention_mask.at[1, -2:].set(0)   # some padding on row 1

    logits = big_model_forward(params, tokens, token_type_ids, attention_mask)
    logits = jax.block_until_ready(logits)

    ref = big_model_reference(params, tokens, token_type_ids, attention_mask)
    assert logits.shape == (B, S, 3)
    assert jnp.allclose(logits, ref, rtol=2e-2, atol=5e-3), "mismatch vs reference"

    print("KERNEL_OK")
</pallas_src>

<mosaic_0001>
module attributes {stable_mosaic.version = 11 : i64} {
  func.func @bert_classifier_kernel(%arg0: i32, %arg1: memref<16x32xf32, #tpu.memory_space<vmem>>, %arg2: memref<2x1x8xf32, #tpu.memory_space<vmem>>, %arg3: memref<1x32xf32, #tpu.memory_space<vmem>>, %arg4: memref<1x32xf32, #tpu.memory_space<vmem>>, %arg5: memref<32x96xbf16, #tpu.memory_space<vmem>>, %arg6: memref<1x96xf32, #tpu.memory_space<vmem>>, %arg7: memref<32x32xbf16, #tpu.memory_space<vmem>>, %arg8: memref<1x32xf32, #tpu.memory_space<vmem>>, %arg9: memref<1x32xf32, #tpu.memory_space<vmem>>, %arg10: memref<1x32xf32, #tpu.memory_space<vmem>>, %arg11: memref<32x64xbf16, #tpu.memory_space<vmem>>, %arg12: memref<1x64xf32, #tpu.memory_space<vmem>>, %arg13: memref<64x32xbf16, #tpu.memory_space<vmem>>, %arg14: memref<1x32xf32, #tpu.memory_space<vmem>>, %arg15: memref<1x32xf32, #tpu.memory_space<vmem>>, %arg16: memref<1x32xf32, #tpu.memory_space<vmem>>, %arg17: memref<32x128xbf16, #tpu.memory_space<vmem>>, %arg18: memref<1x128xf32, #tpu.memory_space<vmem>>, %arg19: memref<16x128xf32, #tpu.memory_space<vmem>>) attributes {dimension_semantics = [#tpu.dimension_semantics<parallel>], iteration_bounds = array<i64: 1>, scalar_prefetch = 0 : i64, scratch_operands = 0 : i64, tpu.core_type = #tpu.core_type<tc>, window_params = [{pipeline_mode = #tpu.pipeline_mode<synchronous>, transform_indices = @transform_0, window_bounds = array<i64: 16, 32>}, {pipeline_mode = #tpu.pipeline_mode<synchronous>, transform_indices = @transform_1, window_bounds = array<i64: 2, 1, 8>}, {pipeline_mode = #tpu.pipeline_mode<synchronous>, transform_indices = @transform_2, window_bounds = array<i64: 1, 32>}, {pipeline_mode = #tpu.pipeline_mode<synchronous>, transform_indices = @transform_3, window_bounds = array<i64: 1, 32>}, {pipeline_mode = #tpu.pipeline_mode<synchronous>, transform_indices = @transform_4, window_bounds = array<i64: 32, 96>}, {pipeline_mode = #tpu.pipeline_mode<synchronous>, transform_indices = @transform_5, window_bounds = array<i64: 1, 96>}, {pipeline_mode = #tpu.pipeline_mode<synchronous>, transform_indices = @transform_6, window_bounds = array<i64: 32, 32>}, {pipeline_mode = #tpu.pipeline_mode<synchronous>, transform_indices = @transform_7, window_bounds = array<i64: 1, 32>}, {pipeline_mode = #tpu.pipeline_mode<synchronous>, transform_indices = @transform_8, window_bounds = array<i64: 1, 32>}, {pipeline_mode = #tpu.pipeline_mode<synchronous>, transform_indices = @transform_9, window_bounds = array<i64: 1, 32>}, {pipeline_mode = #tpu.pipeline_mode<synchronous>, transform_indices = @transform_10, window_bounds = array<i64: 32, 64>}, {pipeline_mode = #tpu.pipeline_mode<synchronous>, transform_indices = @transform_11, window_bounds = array<i64: 1, 64>}, {pipeline_mode = #tpu.pipeline_mode<synchronous>, transform_indices = @transform_12, window_bounds = array<i64: 64, 32>}, {pipeline_mode = #tpu.pipeline_mode<synchronous>, transform_indices = @transform_13, window_bounds = array<i64: 1, 32>}, {pipeline_mode = #tpu.pipeline_mode<synchronous>, transform_indices = @transform_14, window_bounds = array<i64: 1, 32>}, {pipeline_mode = #tpu.pipeline_mode<synchronous>, transform_indices = @transform_15, window_bounds = array<i64: 1, 32>}, {pipeline_mode = #tpu.pipeline_mode<synchronous>, transform_indices = @transform_16, window_bounds = array<i64: 32, 128>}, {pipeline_mode = #tpu.pipeline_mode<synchronous>, transform_indices = @transform_17, window_bounds = array<i64: 1, 128>}, {pipeline_mode = #tpu.pipeline_mode<synchronous>, transform_indices = @transform_18, window_bounds = array<i64: 16, 128>}]} {
    %c0 = arith.constant 0 : index
    %c0_0 = arith.constant 0 : index
    %0 = vector.load %arg1[%c0, %c0_0] : memref<16x32xf32, #tpu.memory_space<vmem>>, vector<16x32xf32>
    %c0_1 = arith.constant 0 : index
    %c0_2 = arith.constant 0 : index
    %c0_3 = arith.constant 0 : index
    %1 = vector.load %arg2[%c0_1, %c0_2, %c0_3] : memref<2x1x8xf32, #tpu.memory_space<vmem>>, vector<2x1x8xf32>
    %c0_4 = arith.constant 0 : index
    %c0_5 = arith.constant 0 : index
    %2 = vector.load %arg3[%c0_4, %c0_5] : memref<1x32xf32, #tpu.memory_space<vmem>>, vector<1x32xf32>
    %c0_6 = arith.constant 0 : index
    %c0_7 = arith.constant 0 : index
    %3 = vector.load %arg4[%c0_6, %c0_7] : memref<1x32xf32, #tpu.memory_space<vmem>>, vector<1x32xf32>
    %cst = arith.constant dense<0.000000e+00> : vector<16xf32>
    %4 = vector.multi_reduction <add>, %0, %cst [1] : vector<16x32xf32> to vector<16xf32>
    %5 = vector.shape_cast %4 : vector<16xf32> to vector<16x1xf32>
    %cst_8 = arith.constant 3.200000e+01 : f32
    %6 = vector.broadcast %cst_8 : f32 to vector<16x1xf32>
    %7 = arith.divf %5, %6 : vector<16x1xf32>
    %8 = vector.broadcast %7 : vector<16x1xf32> to vector<16x32xf32>
    %9 = arith.subf %0, %8 : vector<16x32xf32>
    %10 = arith.mulf %9, %9 : vector<16x32xf32>
    %cst_9 = arith.constant dense<0.000000e+00> : vector<16xf32>
    %11 = vector.multi_reduction <add>, %10, %cst_9 [1] : vector<16x32xf32> to vector<16xf32>
    %12 = vector.shape_cast %11 : vector<16xf32> to vector<16x1xf32>
    %cst_10 = arith.constant 3.200000e+01 : f32
    %13 = vector.broadcast %cst_10 : f32 to vector<16x1xf32>
    %14 = arith.divf %12, %13 : vector<16x1xf32>
    %15 = vector.broadcast %7 : vector<16x1xf32> to vector<16x32xf32>
    %16 = arith.subf %0, %15 : vector<16x32xf32>
    %cst_11 = arith.constant 9.99999996E-13 : f32
    %17 = vector.broadcast %cst_11 : f32 to vector<16x1xf32>
    %18 = arith.addf %14, %17 : vector<16x1xf32>
    %19 = math.rsqrt %18 : vector<16x1xf32>
    %20 = vector.broadcast %19 : vector<16x1xf32> to vector<16x32xf32>
    %21 = arith.mulf %16, %20 : vector<16x32xf32>
    %22 = vector.broadcast %2 : vector<1x32xf32> to vector<16x32xf32>
    %23 = arith.mulf %21, %22 : vector<16x32xf32>
    %24 = vector.broadcast %3 : vector<1x32xf32> to vector<16x32xf32>
    %25 = arith.addf %23, %24 : vector<16x32xf32>
    %c0_12 = arith.constant 0 : index
    %c0_13 = arith.constant 0 : index
    %26 = vector.load %arg5[%c0_12, %c0_13] : memref<32x96xbf16, #tpu.memory_space<vmem>>, vector<32x96xbf16>
    %27 = arith.truncf %25 : vector<16x32xf32> to vector<16x32xbf16>
    %cst_14 = arith.constant dense<0.000000e+00> : vector<16x96xf32>
    %28 = tpu.matmul %27, %26, %cst_14 {dimension_numbers = #tpu.dot_dimension_numbers<[1], [0], [0], [1], [0, 0, 1, 1], [], []>} : vector<16x32xbf16>, vector<32x96xbf16>, vector<16x96xf32> -> vector<16x96xf32>
    %c0_15 = arith.constant 0 : index
    %c0_16 = arith.constant 0 : index
    %29 = vector.load %arg6[%c0_15, %c0_16] : memref<1x96xf32, #tpu.memory_space<vmem>>, vector<1x96xf32>
    %30 = vector.broadcast %29 : vector<1x96xf32> to vector<16x96xf32>
    %31 = arith.addf %28, %30 : vector<16x96xf32>
    %32 = vector.extract_strided_slice %31 {offsets = [0, 0], sizes = [16, 32], strides = [1, 1]} : vector<16x96xf32> to vector<16x32xf32>
    %33 = vector.shape_cast %32 : vector<16x32xf32> to vector<2x8x32xf32>
    %34 = vector.extract_strided_slice %31 {offsets = [0, 32], sizes = [16, 32], strides = [1, 1]} : vector<16x96xf32> to vector<16x32xf32>
    %35 = vector.shape_cast %34 : vector<16x32xf32> to vector<2x8x32xf32>
    %36 = vector.extract_strided_slice %31 {offsets = [0, 64], sizes = [16, 32], strides = [1, 1]} : vector<16x96xf32> to vector<16x32xf32>
    %37 = vector.shape_cast %36 : vector<16x32xf32> to vector<2x8x32xf32>
    %c0_17 = arith.constant 0 : index
    %c0_18 = arith.constant 0 : index
    %38 = vector.load %arg7[%c0_17, %c0_18] : memref<32x32xbf16, #tpu.memory_space<vmem>>, vector<32x32xbf16>
    %cst_19 = arith.constant 0.000000e+00 : f32
    %39 = vector.broadcast %cst_19 : f32 to vector<16x32xf32>
    %40 = vector.extract_strided_slice %33 {offsets = [0, 0, 0], sizes = [2, 8, 16], strides = [1, 1, 1]} : vector<2x8x32xf32> to vector<2x8x16xf32>
    %41 = arith.truncf %40 : vector<2x8x16xf32> to vector<2x8x16xbf16>
    %42 = vector.extract_strided_slice %35 {offsets = [0, 0, 0], sizes = [2, 8, 16], strides = [1, 1, 1]} : vector<2x8x32xf32> to vector<2x8x16xf32>
    %43 = arith.truncf %42 : vector<2x8x16xf32> to vector<2x8x16xbf16>
    %44 = vector.extract_strided_slice %37 {offsets = [0, 0, 0], sizes = [2, 8, 16], strides = [1, 1, 1]} : vector<2x8x32xf32> to vector<2x8x16xf32>
    %45 = arith.truncf %44 : vector<2x8x16xf32> to vector<2x8x16xbf16>
    "tpu.trace_start"() <{level = 10 : i32, message = "bqd,bkd->bqk"}> : () -> ()
    %cst_20 = arith.constant dense<0.000000e+00> : vector<2x8x8xf32>
    %46 = tpu.matmul %41, %43, %cst_20 {dimension_numbers = #tpu.dot_dimension_numbers<[2], [2], [1], [1], [0, 0, 0, 1, 1, 1], [0], [0]>} : vector<2x8x16xbf16>, vector<2x8x16xbf16>, vector<2x8x8xf32> -> vector<2x8x8xf32>
    "tpu.trace_stop"() : () -> ()
    %cst_21 = arith.constant 2.500000e-01 : f32
    %47 = vector.broadcast %cst_21 : f32 to vector<2x8x8xf32>
    %48 = arith.mulf %46, %47 : vector<2x8x8xf32>
    %49 = vector.broadcast %1 : vector<2x1x8xf32> to vector<2x8x8xf32>
    %50 = arith.addf %48, %49 : vector<2x8x8xf32>
    %cst_22 = arith.constant dense<0xFF800000> : vector<2x8xf32>
    %51 = vector.multi_reduction <maximumf>, %50, %cst_22 [2] : vector<2x8x8xf32> to vector<2x8xf32>
    %52 = vector.shape_cast %51 : vector<2x8xf32> to vector<2x8x1xf32>
    %53 = vector.broadcast %52 : vector<2x8x1xf32> to vector<2x8x8xf32>
    %54 = arith.subf %50, %53 : vector<2x8x8xf32>
    %55 = math.exp %54 : vector<2x8x8xf32>
    %cst_23 = arith.constant dense<0.000000e+00> : vector<2x8xf32>
    %56 = vector.multi_reduction <add>, %55, %cst_23 [2] : vector<2x8x8xf32> to vector<2x8xf32>
    %57 = vector.shape_cast %56 : vector<2x8xf32> to vector<2x8x1xf32>
    %58 = tpu.reciprocal %57 {approx = true} : vector<2x8x1xf32> -> vector<2x8x1xf32>
    %59 = vector.broadcast %58 : vector<2x8x1xf32> to vector<2x8x8xf32>
    %60 = arith.mulf %55, %59 : vector<2x8x8xf32>
    %61 = arith.truncf %60 : vector<2x8x8xf32> to vector<2x8x8xbf16>
    "tpu.trace_start"() <{level = 10 : i32, message = "bqk,bkd->bqd"}> : () -> ()
    %cst_24 = arith.constant dense<0.000000e+00> : vector<2x8x16xf32>
    %62 = tpu.matmul %61, %45, %cst_24 {dimension_numbers = #tpu.dot_dimension_numbers<[2], [1], [1], [2], [0, 0, 0, 1, 1, 2], [0], [0]>} : vector<2x8x8xbf16>, vector<2x8x16xbf16>, vector<2x8x16xf32> -> vector<2x8x16xf32>
    "tpu.trace_stop"() : () -> ()
    %63 = vector.shape_cast %62 : vector<2x8x16xf32> to vector<16x16xf32>
    %64 = vector.extract_strided_slice %38 {offsets = [0, 0], sizes = [16, 32], strides = [1, 1]} : vector<32x32xbf16> to vector<16x32xbf16>
    %65 = arith.truncf %63 : vector<16x16xf32> to vector<16x16xbf16>
    %cst_25 = arith.constant dense<0.000000e+00> : vector<16x32xf32>
    %66 = tpu.matmul %65, %64, %cst_25 {dimension_numbers = #tpu.dot_dimension_numbers<[1], [0], [0], [1], [0, 0, 1, 1], [], []>} : vector<16x16xbf16>, vector<16x32xbf16>, vector<16x32xf32> -> vector<16x32xf32>
    %67 = arith.addf %39, %66 : vector<16x32xf32>
    %68 = vector.extract_strided_slice %33 {offsets = [0, 0, 16], sizes = [2, 8, 16], strides = [1, 1, 1]} : vector<2x8x32xf32> to vector<2x8x16xf32>
    %69 = arith.truncf %68 : vector<2x8x16xf32> to vector<2x8x16xbf16>
    %70 = vector.extract_strided_slice %35 {offsets = [0, 0, 16], sizes = [2, 8, 16], strides = [1, 1, 1]} : vector<2x8x32xf32> to vector<2x8x16xf32>
    %71 = arith.truncf %70 : vector<2x8x16xf32> to vector<2x8x16xbf16>
    %72 = vector.extract_strided_slice %37 {offsets = [0, 0, 16], sizes = [2, 8, 16], strides = [1, 1, 1]} : vector<2x8x32xf32> to vector<2x8x16xf32>
    %73 = arith.truncf %72 : vector<2x8x16xf32> to vector<2x8x16xbf16>
    "tpu.trace_start"() <{level = 10 : i32, message = "bqd,bkd->bqk"}> : () -> ()
    %cst_26 = arith.constant dense<0.000000e+00> : vector<2x8x8xf32>
    %74 = tpu.matmul %69, %71, %cst_26 {dimension_numbers = #tpu.dot_dimension_numbers<[2], [2], [1], [1], [0, 0, 0, 1, 1, 1], [0], [0]>} : vector<2x8x16xbf16>, vector<2x8x16xbf16>, vector<2x8x8xf32> -> vector<2x8x8xf32>
    "tpu.trace_stop"() : () -> ()
    %cst_27 = arith.constant 2.500000e-01 : f32
    %75 = vector.broadcast %cst_27 : f32 to vector<2x8x8xf32>
    %76 = arith.mulf %74, %75 : vector<2x8x8xf32>
    %77 = vector.broadcast %1 : vector<2x1x8xf32> to vector<2x8x8xf32>
    %78 = arith.addf %76, %77 : vector<2x8x8xf32>
    %cst_28 = arith.constant dense<0xFF800000> : vector<2x8xf32>
    %79 = vector.multi_reduction <maximumf>, %78, %cst_28 [2] : vector<2x8x8xf32> to vector<2x8xf32>
    %80 = vector.shape_cast %79 : vector<2x8xf32> to vector<2x8x1xf32>
    %81 = vector.broadcast %80 : vector<2x8x1xf32> to vector<2x8x8xf32>
    %82 = arith.subf %78, %81 : vector<2x8x8xf32>
    %83 = math.exp %82 : vector<2x8x8xf32>
    %cst_29 = arith.constant dense<0.000000e+00> : vector<2x8xf32>
    %84 = vector.multi_reduction <add>, %83, %cst_29 [2] : vector<2x8x8xf32> to vector<2x8xf32>
    %85 = vector.shape_cast %84 : vector<2x8xf32> to vector<2x8x1xf32>
    %86 = tpu.reciprocal %85 {approx = true} : vector<2x8x1xf32> -> vector<2x8x1xf32>
    %87 = vector.broadcast %86 : vector<2x8x1xf32> to vector<2x8x8xf32>
    %88 = arith.mulf %83, %87 : vector<2x8x8xf32>
    %89 = arith.truncf %88 : vector<2x8x8xf32> to vector<2x8x8xbf16>
    "tpu.trace_start"() <{level = 10 : i32, message = "bqk,bkd->bqd"}> : () -> ()
    %cst_30 = arith.constant dense<0.000000e+00> : vector<2x8x16xf32>
    %90 = tpu.matmul %89, %73, %cst_30 {dimension_numbers = #tpu.dot_dimension_numbers<[2], [1], [1], [2], [0, 0, 0, 1, 1, 2], [0], [0]>} : vector<2x8x8xbf16>, vector<2x8x16xbf16>, vector<2x8x16xf32> -> vector<2x8x16xf32>
    "tpu.trace_stop"() : () -> ()
    %91 = vector.shape_cast %90 : vector<2x8x16xf32> to vector<16x16xf32>
    %92 = vector.extract_strided_slice %38 {offsets = [16, 0], sizes = [16, 32], strides = [1, 1]} : vector<32x32xbf16> to vector<16x32xbf16>
    %93 = arith.truncf %91 : vector<16x16xf32> to vector<16x16xbf16>
    %cst_31 = arith.constant dense<0.000000e+00> : vector<16x32xf32>
    %94 = tpu.matmul %93, %92, %cst_31 {dimension_numbers = #tpu.dot_dimension_numbers<[1], [0], [0], [1], [0, 0, 1, 1], [], []>} : vector<16x16xbf16>, vector<16x32xbf16>, vector<16x32xf32> -> vector<16x32xf32>
    %95 = arith.addf %67, %94 : vector<16x32xf32>
    %c0_32 = arith.constant 0 : index
    %c0_33 = arith.constant 0 : index
    %96 = vector.load %arg8[%c0_32, %c0_33] : memref<1x32xf32, #tpu.memory_space<vmem>>, vector<1x32xf32>
    %97 = vector.broadcast %96 : vector<1x32xf32> to vector<16x32xf32>
    %98 = arith.addf %95, %97 : vector<16x32xf32>
    %99 = arith.addf %25, %98 : vector<16x32xf32>
    %c0_34 = arith.constant 0 : index
    %c0_35 = arith.constant 0 : index
    %100 = vector.load %arg9[%c0_34, %c0_35] : memref<1x32xf32, #tpu.memory_space<vmem>>, vector<1x32xf32>
    %c0_36 = arith.constant 0 : index
    %c0_37 = arith.constant 0 : index
    %101 = vector.load %arg10[%c0_36, %c0_37] : memref<1x32xf32, #tpu.memory_space<vmem>>, vector<1x32xf32>
    %cst_38 = arith.constant dense<0.000000e+00> : vector<16xf32>
    %102 = vector.multi_reduction <add>, %99, %cst_38 [1] : vector<16x32xf32> to vector<16xf32>
    %103 = vector.shape_cast %102 : vector<16xf32> to vector<16x1xf32>
    %cst_39 = arith.constant 3.200000e+01 : f32
    %104 = vector.broadcast %cst_39 : f32 to vector<16x1xf32>
    %105 = arith.divf %103, %104 : vector<16x1xf32>
    %106 = vector.broadcast %105 : vector<16x1xf32> to vector<16x32xf32>
    %107 = arith.subf %99, %106 : vector<16x32xf32>
    %108 = arith.mulf %107, %107 : vector<16x32xf32>
    %cst_40 = arith.constant dense<0.000000e+00> : vector<16xf32>
    %109 = vector.multi_reduction <add>, %108, %cst_40 [1] : vector<16x32xf32> to vector<16xf32>
    %110 = vector.shape_cast %109 : vector<16xf32> to vector<16x1xf32>
    %cst_41 = arith.constant 3.200000e+01 : f32
    %111 = vector.broadcast %cst_41 : f32 to vector<16x1xf32>
    %112 = arith.divf %110, %111 : vector<16x1xf32>
    %113 = vector.broadcast %105 : vector<16x1xf32> to vector<16x32xf32>
    %114 = arith.subf %99, %113 : vector<16x32xf32>
    %cst_42 = arith.constant 9.99999996E-13 : f32
    %115 = vector.broadcast %cst_42 : f32 to vector<16x1xf32>
    %116 = arith.addf %112, %115 : vector<16x1xf32>
    %117 = math.rsqrt %116 : vector<16x1xf32>
    %118 = vector.broadcast %117 : vector<16x1xf32> to vector<16x32xf32>
    %119 = arith.mulf %114, %118 : vector<16x32xf32>
    %120 = vector.broadcast %100 : vector<1x32xf32> to vector<16x32xf32>
    %121 = arith.mulf %119, %120 : vector<16x32xf32>
    %122 = vector.broadcast %101 : vector<1x32xf32> to vector<16x32xf32>
    %123 = arith.addf %121, %122 : vector<16x32xf32>
    %c0_43 = arith.constant 0 : index
    %c0_44 = arith.constant 0 : index
    %124 = vector.load %arg11[%c0_43, %c0_44] : memref<32x64xbf16, #tpu.memory_space<vmem>>, vector<32x64xbf16>
    %125 = arith.truncf %123 : vector<16x32xf32> to vector<16x32xbf16>
    %cst_45 = arith.constant dense<0.000000e+00> : vector<16x64xf32>
    %126 = tpu.matmul %125, %124, %cst_45 {dimension_numbers = #tpu.dot_dimension_numbers<[1], [0], [0], [1], [0, 0, 1, 1], [], []>} : vector<16x32xbf16>, vector<32x64xbf16>, vector<16x64xf32> -> vector<16x64xf32>
    %c0_46 = arith.constant 0 : index
    %c0_47 = arith.constant 0 : index
    %127 = vector.load %arg12[%c0_46, %c0_47] : memref<1x64xf32, #tpu.memory_space<vmem>>, vector<1x64xf32>
    %128 = vector.broadcast %127 : vector<1x64xf32> to vector<16x64xf32>
    %129 = arith.addf %126, %128 : vector<16x64xf32>
    %130 = arith.mulf %129, %129 : vector<16x64xf32>
    %131 = arith.mulf %129, %130 : vector<16x64xf32>
    %cst_48 = arith.constant 4.471500e-02 : f32
    %132 = vector.broadcast %cst_48 : f32 to vector<16x64xf32>
    %133 = arith.mulf %132, %131 : vector<16x64xf32>
    %134 = arith.addf %129, %133 : vector<16x64xf32>
    %cst_49 = arith.constant 0.797884583 : f32
    %135 = vector.broadcast %cst_49 : f32 to vector<16x64xf32>
    %136 = arith.mulf %135, %134 : vector<16x64xf32>
    %137 = math.tanh %136 : vector<16x64xf32>
    %cst_50 = arith.constant 1.000000e+00 : f32
    %138 = vector.broadcast %cst_50 : f32 to vector<16x64xf32>
    %139 = arith.addf %138, %137 : vector<16x64xf32>
    %cst_51 = arith.constant 5.000000e-01 : f32
    %140 = vector.broadcast %cst_51 : f32 to vector<16x64xf32>
    %141 = arith.mulf %140, %139 : vector<16x64xf32>
    %142 = arith.mulf %129, %141 : vector<16x64xf32>
    %c0_52 = arith.constant 0 : index
    %c0_53 = arith.constant 0 : index
    %143 = vector.load %arg13[%c0_52, %c0_53] : memref<64x32xbf16, #tpu.memory_space<vmem>>, vector<64x32xbf16>
    %144 = arith.truncf %142 : vector<16x64xf32> to vector<16x64xbf16>
    %cst_54 = arith.constant dense<0.000000e+00> : vector<16x32xf32>
    %145 = tpu.matmul %144, %143, %cst_54 {dimension_numbers = #tpu.dot_dimension_numbers<[1], [0], [0], [1], [0, 0, 1, 1], [], []>} : vector<16x64xbf16>, vector<64x32xbf16>, vector<16x32xf32> -> vector<16x32xf32>
    %c0_55 = arith.constant 0 : index
    %c0_56 = arith.constant 0 : index
    %146 = vector.load %arg14[%c0_55, %c0_56] : memref<1x32xf32, #tpu.memory_space<vmem>>, vector<1x32xf32>
    %147 = vector.broadcast %146 : vector<1x32xf32> to vector<16x32xf32>
    %148 = arith.addf %145, %147 : vector<16x32xf32>
    %149 = arith.addf %123, %148 : vector<16x32xf32>
    %c0_57 = arith.constant 0 : index
    %c0_58 = arith.constant 0 : index
    %150 = vector.load %arg15[%c0_57, %c0_58] : memref<1x32xf32, #tpu.memory_space<vmem>>, vector<1x32xf32>
    %c0_59 = arith.constant 0 : index
    %c0_60 = arith.constant 0 : index
    %151 = vector.load %arg16[%c0_59, %c0_60] : memref<1x32xf32, #tpu.memory_space<vmem>>, vector<1x32xf32>
    %cst_61 = arith.constant dense<0.000000e+00> : vector<16xf32>
    %152 = vector.multi_reduction <add>, %149, %cst_61 [1] : vector<16x32xf32> to vector<16xf32>
    %153 = vector.shape_cast %152 : vector<16xf32> to vector<16x1xf32>
    %cst_62 = arith.constant 3.200000e+01 : f32
    %154 = vector.broadcast %cst_62 : f32 to vector<16x1xf32>
    %155 = arith.divf %153, %154 : vector<16x1xf32>
    %156 = vector.broadcast %155 : vector<16x1xf32> to vector<16x32xf32>
    %157 = arith.subf %149, %156 : vector<16x32xf32>
    %158 = arith.mulf %157, %157 : vector<16x32xf32>
    %cst_63 = arith.constant dense<0.000000e+00> : vector<16xf32>
    %159 = vector.multi_reduction <add>, %158, %cst_63 [1] : vector<16x32xf32> to vector<16xf32>
    %160 = vector.shape_cast %159 : vector<16xf32> to vector<16x1xf32>
    %cst_64 = arith.constant 3.200000e+01 : f32
    %161 = vector.broadcast %cst_64 : f32 to vector<16x1xf32>
    %162 = arith.divf %160, %161 : vector<16x1xf32>
    %163 = vector.broadcast %155 : vector<16x1xf32> to vector<16x32xf32>
    %164 = arith.subf %149, %163 : vector<16x32xf32>
    %cst_65 = arith.constant 9.99999996E-13 : f32
    %165 = vector.broadcast %cst_65 : f32 to vector<16x1xf32>
    %166 = arith.addf %162, %165 : vector<16x1xf32>
    %167 = math.rsqrt %166 : vector<16x1xf32>
    %168 = vector.broadcast %167 : vector<16x1xf32> to vector<16x32xf32>
    %169 = arith.mulf %164, %168 : vector<16x32xf32>
    %170 = vector.broadcast %150 : vector<1x32xf32> to vector<16x32xf32>
    %171 = arith.mulf %169, %170 : vector<16x32xf32>
    %172 = vector.broadcast %151 : vector<1x32xf32> to vector<16x32xf32>
    %173 = arith.addf %171, %172 : vector<16x32xf32>
    %c0_66 = arith.constant 0 : index
    %c0_67 = arith.constant 0 : index
    %174 = vector.load %arg17[%c0_66, %c0_67] : memref<32x128xbf16, #tpu.memory_space<vmem>>, vector<32x128xbf16>
    %175 = arith.truncf %173 : vector<16x32xf32> to vector<16x32xbf16>
    %cst_68 = arith.constant dense<0.000000e+00> : vector<16x128xf32>
    %176 = tpu.matmul %175, %174, %cst_68 {dimension_numbers = #tpu.dot_dimension_numbers<[1], [0], [0], [1], [0, 0, 1, 1], [], []>} : vector<16x32xbf16>, vector<32x128xbf16>, vector<16x128xf32> -> vector<16x128xf32>
    %c0_69 = arith.constant 0 : index
    %c0_70 = arith.constant 0 : index
    %177 = vector.load %arg18[%c0_69, %c0_70] : memref<1x128xf32, #tpu.memory_space<vmem>>, vector<1x128xf32>
    %178 = vector.broadcast %177 : vector<1x128xf32> to vector<16x128xf32>
    %179 = arith.addf %176, %178 : vector<16x128xf32>
    %c0_71 = arith.constant 0 : index
    %c0_72 = arith.constant 0 : index
    %180 = vector.load %arg19[%c0_71, %c0_72] : memref<16x128xf32, #tpu.memory_space<vmem>>, vector<16x128xf32>
    tpu.vector_store %arg19[%c0_71, %c0_72], %179 {strides = array<i32>} : memref<16x128xf32, #tpu.memory_space<vmem>>, vector<16x128xf32>,
    return
  }
  func.func @transform_0(%arg0: i32) -> (i32, i32) {
    %c0_i32 = arith.constant 0 : i32
    %c0_i32_0 = arith.constant 0 : i32
    %c0_i32_1 = arith.constant 0 : i32
    return %c0_i32, %c0_i32_0 : i32, i32
  }
  func.func @transform_1(%arg0: i32) -> (i32, i32, i32) {
    %c0_i32 = arith.constant 0 : i32
    %c0_i32_0 = arith.constant 0 : i32
    %c0_i32_1 = arith.constant 0 : i32
    %c0_i32_2 = arith.constant 0 : i32
    return %c0_i32, %c0_i32_0, %c0_i32_1 : i32, i32, i32
  }
  func.func @transform_2(%arg0: i32) -> (i32, i32) {
    %c0_i32 = arith.constant 0 : i32
    %c0_i32_0 = arith.constant 0 : i32
    %c0_i32_1 = arith.constant 0 : i32
    return %c0_i32, %c0_i32_0 : i32, i32
  }
  func.func @transform_3(%arg0: i32) -> (i32, i32) {
    %c0_i32 = arith.constant 0 : i32
    %c0_i32_0 = arith.constant 0 : i32
    %c0_i32_1 = arith.constant 0 : i32
    return %c0_i32, %c0_i32_0 : i32, i32
  }
  func.func @transform_4(%arg0: i32) -> (i32, i32) {
    %c0_i32 = arith.constant 0 : i32
    %c0_i32_0 = arith.constant 0 : i32
    %c0_i32_1 = arith.constant 0 : i32
    return %c0_i32, %c0_i32_0 : i32, i32
  }
  func.func @transform_5(%arg0: i32) -> (i32, i32) {
    %c0_i32 = arith.constant 0 : i32
    %c0_i32_0 = arith.constant 0 : i32
    %c0_i32_1 = arith.constant 0 : i32
    return %c0_i32, %c0_i32_0 : i32, i32
  }
  func.func @transform_6(%arg0: i32) -> (i32, i32) {
    %c0_i32 = arith.constant 0 : i32
    %c0_i32_0 = arith.constant 0 : i32
    %c0_i32_1 = arith.constant 0 : i32
    return %c0_i32, %c0_i32_0 : i32, i32
  }
  func.func @transform_7(%arg0: i32) -> (i32, i32) {
    %c0_i32 = arith.constant 0 : i32
    %c0_i32_0 = arith.constant 0 : i32
    %c0_i32_1 = arith.constant 0 : i32
    return %c0_i32, %c0_i32_0 : i32, i32
  }
  func.func @transform_8(%arg0: i32) -> (i32, i32) {
    %c0_i32 = arith.constant 0 : i32
    %c0_i32_0 = arith.constant 0 : i32
    %c0_i32_1 = arith.constant 0 : i32
    return %c0_i32, %c0_i32_0 : i32, i32
  }
  func.func @transform_9(%arg0: i32) -> (i32, i32) {
    %c0_i32 = arith.constant 0 : i32
    %c0_i32_0 = arith.constant 0 : i32
    %c0_i32_1 = arith.constant 0 : i32
    return %c0_i32, %c0_i32_0 : i32, i32
  }
  func.func @transform_10(%arg0: i32) -> (i32, i32) {
    %c0_i32 = arith.constant 0 : i32
    %c0_i32_0 = arith.constant 0 : i32
    %c0_i32_1 = arith.constant 0 : i32
    return %c0_i32, %c0_i32_0 : i32, i32
  }
  func.func @transform_11(%arg0: i32) -> (i32, i32) {
    %c0_i32 = arith.constant 0 : i32
    %c0_i32_0 = arith.constant 0 : i32
    %c0_i32_1 = arith.constant 0 : i32
    return %c0_i32, %c0_i32_0 : i32, i32
  }
  func.func @transform_12(%arg0: i32) -> (i32, i32) {
    %c0_i32 = arith.constant 0 : i32
    %c0_i32_0 = arith.constant 0 : i32
    %c0_i32_1 = arith.constant 0 : i32
    return %c0_i32, %c0_i32_0 : i32, i32
  }
  func.func @transform_13(%arg0: i32) -> (i32, i32) {
    %c0_i32 = arith.constant 0 : i32
    %c0_i32_0 = arith.constant 0 : i32
    %c0_i32_1 = arith.constant 0 : i32
    return %c0_i32, %c0_i32_0 : i32, i32
  }
  func.func @transform_14(%arg0: i32) -> (i32, i32) {
    %c0_i32 = arith.constant 0 : i32
    %c0_i32_0 = arith.constant 0 : i32
    %c0_i32_1 = arith.constant 0 : i32
    return %c0_i32, %c0_i32_0 : i32, i32
  }
  func.func @transform_15(%arg0: i32) -> (i32, i32) {
    %c0_i32 = arith.constant 0 : i32
    %c0_i32_0 = arith.constant 0 : i32
    %c0_i32_1 = arith.constant 0 : i32
    return %c0_i32, %c0_i32_0 : i32, i32
  }
  func.func @transform_16(%arg0: i32) -> (i32, i32) {
    %c0_i32 = arith.constant 0 : i32
    %c0_i32_0 = arith.constant 0 : i32
    %c0_i32_1 = arith.constant 0 : i32
    return %c0_i32, %c0_i32_0 : i32, i32
  }
  func.func @transform_17(%arg0: i32) -> (i32, i32) {
    %c0_i32 = arith.constant 0 : i32
    %c0_i32_0 = arith.constant 0 : i32
    %c0_i32_1 = arith.constant 0 : i32
    return %c0_i32, %c0_i32_0 : i32, i32
  }
  func.func @transform_18(%arg0: i32) -> (i32, i32) {
    %c0_i32 = arith.constant 0 : i32
    %c0_i32_0 = arith.constant 0 : i32
    %c0_i32_1 = arith.constant 0 : i32
    return %c0_i32, %c0_i32_0 : i32, i32
  }
}

</mosaic_0001>

<bundles_post_ra>
// kernel: tpu_custom_call.1
= control target key start
LH: loop header
LB: loop body
LE: loop exit
PB: predicated region body
PF: predicated region fallthrough
CT: control target
= control target key end

     0   :  { %s1962_s0 = inlined_call_operand.vmem [shape: f32[16,32], index: 0, kind: input, shape index: {}]   ;;  %s1963_s1 = inlined_call_operand.hbm [shape: f32[2,1,8], index: 1, kind: input, shape index: {}]   ;;  %s1964_s2 = inlined_call_operand.hbm [shape: f32[1,32], index: 2, kind: input, shape index: {}]   ;;  %s1965_s3 = inlined_call_operand.hbm [shape: f32[1,32], index: 3, kind: input, shape index: {}]   ;;  %s1966_s4 = inlined_call_operand.vmem [shape: bf16[32,96], index: 4, kind: input, shape index: {}]   ;;  %s1967_s5 = inlined_call_operand.hbm [shape: f32[1,96], index: 5, kind: input, shape index: {}]   ;;  %s1968_s6 = inlined_call_operand.vmem [shape: bf16[32,32], index: 6, kind: input, shape index: {}]   ;;  %s1969_s7 = inlined_call_operand.hbm [shape: f32[1,32], index: 7, kind: input, shape index: {}]   ;;  %s1970_s8 = inlined_call_operand.hbm [shape: f32[1,32], index: 8, kind: input, shape index: {}]   ;;  %s1971_s9 = inlined_call_operand.hbm [shape: f32[1,32], index: 9, kind: input, shape index: {}]   ;;  %s1972_s10 = inlined_call_operand.vmem [shape: bf16[32,64], index: 10, kind: input, shape index: {}]   ;;  %s1973_s11 = inlined_call_operand.vmem [shape: f32[1,64], index: 11, kind: input, shape index: {}]   ;;  %s1974_s12 = inlined_call_operand.vmem [shape: bf16[64,32], index: 12, kind: input, shape index: {}]   ;;  %s1975_s13 = inlined_call_operand.vmem [shape: f32[1,32], index: 13, kind: input, shape index: {}]   ;;  %s1976_s14 = inlined_call_operand.vmem [shape: f32[1,32], index: 14, kind: input, shape index: {}]   ;;  %s1977_s15 = inlined_call_operand.vmem [shape: f32[1,32], index: 15, kind: input, shape index: {}]   ;;  %s1978_s16 = inlined_call_operand.hbm [shape: bf16[32,128], index: 16, kind: input, shape index: {}]   ;;  %s1979_s17 = inlined_call_operand.vmem [shape: f32[1,128], index: 17, kind: input, shape index: {}]   ;;  %s1980_s18 = inlined_call_operand.hbm [shape: f32[16,128], index: 18, kind: output, shape index: {}]  }
   0x1   :  { %1982 = sst [smem:[#allocation23_spill]] %s1962_s0 }
   0x2   :  { %1983 = sst [smem:[#allocation24_spill]] %s1963_s1 }
   0x3   :  { %1984 = sst [smem:[#allocation25_spill]] %s1964_s2 }
   0x4   :  { %23 = vsyncpa [#allocation3], 0 }
   0x5   :  { %24 = vsyncpa [#allocation6], 0 }
   0x6   :  { %25 = vsyncpa [#allocation9], 0 }
   0x7   :  { %26 = vsyncpa [#allocation12], 0 }
   0x8   :  { %27 = vsyncpa [#allocation15], 0 }
   0x9   :  { %28 = vsyncpa [#allocation4], 0  ;;  %s1634_s27 = smov [#allocation5]   ;;  %s1635_s29 = smov [#allocation8]  }
   0xa   :  { %s49_s28 = sshll.u32 %s1634_s27, 4  ;;  %s71_s30 = sshll.u32 %s1635_s29, 4  ;;  %s50_s28 = int_to_ptr.vmem [resolvable:$true] %s49_s28  ;;  %s72_s30 = int_to_ptr.vmem [resolvable:$true] %s71_s30 }
   0xb   :  { %s1450_s0 = scalar_lea.vmem %s50_s28, 16  ;;  %s1454_s19 = scalar_lea.vmem %s50_s28, 32 }
   0xc   :  { %p1451_p0 = scmp.ne.s32.totalorder %s50_s28, %s1450_s0  ;;  %p1455_p1 = scmp.lt.s32.totalorder %s50_s28, %s50_s28 }
   0xd   :  { %p1456_p2 = scmp.lt.s32.totalorder %s1454_s19, %s1450_s0 }
   0xf   :  { %p1457_p3 = por %p1456_p2, %p1455_p1 }
  0x11   :  { %p1458_p4 = pnand %p1457_p3, %p1451_p0 }
  0x13   :  { %1461 = shalt.err (!%p1458_p4)
}
  0x14   :  { %s1985_s21 = sld [smem:[#allocation25_spill]]  ;;  %s1470_s22 = scalar_lea.vmem %s72_s30, 16 }
  0x15   :  { %p1471_p5 = scmp.ne.s32.totalorder %s72_s30, %s1470_s22  ;;  %s1474_s2 = scalar_lea.vmem %s72_s30, 32 }
  0x16   :  { %p1475_p6 = scmp.lt.s32.totalorder %s72_s30, %s72_s30  ;;  %p1476_p7 = scmp.lt.s32.totalorder %s1474_s2, %s1470_s22 }
  0x18   :  { %p1477_p8 = por %p1476_p7, %p1475_p6 }
  0x1a   :  { %52 = dma.hbm_to_vmem [thread:$0]  %s1985_s21, 16, %s50_s28, [#allocation6]  }
  0x1b   :  { %p1478_p9 = pnand %p1477_p8, %p1471_p5 }
  0x1d   :  { %1481 = shalt.err (!%p1478_p9)
}
  0x1e   :  { %74 = dma.hbm_to_vmem [thread:$0]  %s1967_s5, 16, %s72_s30, [#allocation9]  }
  0x1f   :  { %s1636_s25 = smov [#allocation11]   ;;  %s1637_s27 = smov [#allocation2]  }
  0x20   :  { %s93_s26 = sshll.u32 %s1636_s25, 4  ;;  %s36_s29 = sshll.u32 %s1637_s27, 4  ;;  %s94_s26 = int_to_ptr.vmem [resolvable:$true] %s93_s26  ;;  %s37_s29 = int_to_ptr.vmem [resolvable:$true] %s36_s29 }
  0x21   :  { %s1490_s0 = scalar_lea.vmem %s94_s26, 16  ;;  %s1494_s28 = scalar_lea.vmem %s94_s26, 32 }
  0x22   :  { %p1491_p10 = scmp.ne.s32.totalorder %s94_s26, %s1490_s0  ;;  %p1495_p11 = scmp.lt.s32.totalorder %s94_s26, %s94_s26 }
  0x23   :  { %p1496_p12 = scmp.lt.s32.totalorder %s1494_s28, %s1490_s0 }
  0x25   :  { %p1497_p13 = por %p1496_p12, %p1495_p11 }
  0x27   :  { %p1498_p0 = pnand %p1497_p13, %p1491_p10 }
  0x29   :  { %1501 = shalt.err (!%p1498_p0)
}
  0x2a   :  { %96 = dma.hbm_to_vmem [thread:$0]  %s1970_s8, 16, %s94_s26, [#allocation12]  }
  0x2b   :  { %s1510_s20 = scalar_lea.vmem %s37_s29, 32  ;;  %p1515_p2 = scmp.lt.s32.totalorder %s37_s29, %s37_s29 }
  0x2c   :  { %p1511_p1 = scmp.ne.s32.totalorder %s37_s29, %s1510_s20  ;;  %p1516_p3 = scmp.lt.s32.totalorder %s1510_s20, %s1510_s20 }
  0x2e   :  { %p1517_p4 = por %p1516_p3, %p1515_p2 }
  0x30   :  { %p1518_p5 = pnand %p1517_p4, %p1511_p1 }
  0x32   :  { %1521 = shalt.err (!%p1518_p5)
}
  0x33   :  { %s1638_s5 = smov 16   ;;  %s1639_s30 = smov 1  }
  0x34   :  { %s1986_s2 = sld [smem:[#allocation24_spill]]  ;;  %s1640_s23 = smov [#allocation7]  }
  0x35   :  { %s59_s24 = sshll.u32 %s1640_s23, 4  ;;  %s1641_s25 = smov [#allocation10]   ;;  %s60_s24 = int_to_ptr.vmem [resolvable:$true] %s59_s24 }
  0x36   :  { %s83_s27 = sshll.u32 %s1641_s25, 4  ;;  %s1530_s8 = scalar_lea.vmem %s60_s24, 16  ;;  %s84_s27 = int_to_ptr.vmem [resolvable:$true] %s83_s27 }
  0x37   :  { %p1531_p6 = scmp.ne.s32.totalorder %s60_s24, %s1530_s8  ;;  %s1534_s26 = scalar_lea.vmem %s60_s24, 32 }
  0x38   :  { %p1535_p7 = scmp.lt.s32.totalorder %s60_s24, %s60_s24  ;;  %p1536_p8 = scmp.lt.s32.totalorder %s1534_s26, %s1530_s8 }
  0x3a   :  { %42 = dma.hbm_to_vmem [thread:$0]  %s1986_s2, 32, %s37_s29, [#allocation3], %s1638_s5, %s1638_s5, %s1639_s30  }
  0x3b   :  { %p1537_p9 = por %p1536_p8, %p1535_p7 }
  0x3d   :  { %p1538_p10 = pnand %p1537_p9, %p1531_p6 }
  0x3f   :  { %1541 = shalt.err (!%p1538_p10)
}
  0x40   :  { %62 = dma.hbm_to_vmem [thread:$0]  %s1965_s3, 16, %s60_s24, [#allocation6]  }
  0x41   :  { %s1550_s19 = scalar_lea.vmem %s84_s27, 16  ;;  %s1554_s29 = scalar_lea.vmem %s84_s27, 32 }
  0x42   :  { %p1551_p11 = scmp.ne.s32.totalorder %s84_s27, %s1550_s19  ;;  %p1555_p12 = scmp.lt.s32.totalorder %s84_s27, %s84_s27 }
  0x43   :  { %p1556_p13 = scmp.lt.s32.totalorder %s1554_s29, %s1550_s19 }
  0x45   :  { %p1557_p0 = por %p1556_p13, %p1555_p12 }
  0x47   :  { %p1558_p1 = pnand %p1557_p0, %p1551_p11 }
  0x49   :  { %1561 = shalt.err (!%p1558_p1)
}
  0x4a   :  { %86 = dma.hbm_to_vmem [thread:$0]  %s1969_s7, 16, %s84_s27, [#allocation9]  }
  0x4b   :  { %s1642_s5 = smov [#allocation13]   ;;  %s1643_s21 = smov [#allocation14]  }
  0x4c   :  { %s103_s30 = sshll.u32 %s1642_s5, 4  ;;  %s124_s22 = sshll.u32 %s1643_s21, 4  ;;  %s104_s30 = int_to_ptr.vmem [resolvable:$true] %s103_s30  ;;  %s125_s22 = int_to_ptr.vmem [resolvable:$true] %s124_s22 }
  0x4d   :  { %s1570_s2 = scalar_lea.vmem %s104_s30, 16  ;;  %s1574_s3 = scalar_lea.vmem %s104_s30, 32 }
  0x4e   :  { %p1571_p2 = scmp.ne.s32.totalorder %s104_s30, %s1570_s2  ;;  %p1575_p3 = scmp.lt.s32.totalorder %s104_s30, %s104_s30 }
  0x4f   :  { %p1576_p4 = scmp.lt.s32.totalorder %s1574_s3, %s1570_s2 }
  0x51   :  { %p1577_p5 = por %p1576_p4, %p1575_p3 }
  0x53   :  { %p1578_p6 = pnand %p1577_p5, %p1571_p2 }
  0x55   :  { %1581 = shalt.err (!%p1578_p6)
}
  0x56   :  { %106 = dma.hbm_to_vmem [thread:$0]  %s1971_s9, 16, %s104_s30, [#allocation12]  }
  0x57   :  { %s1590_s25 = scalar_lea.vmem %s125_s22, 256  ;;  %p1595_p8 = scmp.lt.s32.totalorder %s125_s22, %s125_s22 }
  0x58   :  { %p1591_p7 = scmp.ne.s32.totalorder %s125_s22, %s1590_s25  ;;  %p1596_p9 = scmp.lt.s32.totalorder %s1590_s25, %s1590_s25 }
  0x5a   :  { %p1597_p10 = por %p1596_p9, %p1595_p8 }
  0x5c   :  { %p1598_p11 = pnand %p1597_p10, %p1591_p7 }
  0x5e   :  { %1601 = shalt.err (!%p1598_p11)
}
  0x5f   :  { %s1644_s7 = smov 64   ;;  %s1645_s27 = smov 4  }
  0x60   :  { %130 = dma.hbm_to_vmem [thread:$0]  %s1978_s16, 256, %s125_s22, [#allocation15], %s1644_s7, %s1644_s7, %s1645_s27  }
  0x61   :  { %1622 = dma.done.wait [#allocation3], 32  }
  0x62   :  { %1623 = vsyncadd [#allocation3], 4294967264 }
  0x63   :  { %1624 = dma.done.wait [#allocation6], 32  }
  0x64   :  { %1625 = vsyncadd [#allocation6], 4294967264 }
  0x65   :  { %1626 = dma.done.wait [#allocation9], 32  }
  0x66   :  { %1627 = vsyncadd [#allocation9], 4294967264 }
  0x67   :  { %1628 = dma.done.wait [#allocation12], 32  }
  0x68   :  { %1629 = vsyncadd [#allocation12], 4294967264 }
  0x69   :  { %1630 = dma.done.wait [#allocation15], 256  }
  0x6a   :  { %1631 = vsyncadd [#allocation15], 4294967040  ;;  %vm164_vm0 = vcmask 261120   ;;  %s1987_s28 = sld [smem:[#allocation23_spill]]  ;;  %v1398_v14 = vld [vmem:[%s1966_s4 + $0x8] sm:$0xff]   ;;  %v1646_v15 = vmov 0.0  }
  0x6b   :  { %1281 = vmatprep.subr.bf16.mxu0 %v1646_v15  ;;  %vm1647_vm1 = vmmov 0   ;;  %v1399_v16 = vld [vmem:[%s1966_s4] sm:$0xff]   ;;  %1289 = vmatprep.subr.bf16.mxu1 %v1646_v15  ;;  %s1648_s4 = smov 96   ;;  %vm285_vm2 = vcmask 130048   ;;  %vm397_vm3 = vcmask 64512   ;;  %s1649_s30 = smov 80  }
  0x6c   :  { %1285 = vmatprep.mubr.msk.bf16.mxu0 %vm1647_vm1, %v1646_v15  ;;  %1282 = vmatpush3.bf16.msra.mxu0 %v1398_v14  ;;  %v1208_v25 = vld [vmem:[#allocation5] ss:$0 sm:$0xff]  ;;  %v1209_v29 = vld [vmem:[#allocation7] ss:$0 sm:$0xff]  ;;  %v1210_v34 = vld [vmem:[#allocation8] ss:$0 sm:$0xff] }
  0x6d   :  { %1283 = vmatprep.subr.bf16.mxu0 %v1646_v15  ;;  %1291 = vmatprep.mubr.msk.bf16.mxu1 %vm1647_vm1, %v1646_v15  ;;  %v1827_v48 = vld [vmem:[#allocation2] ss:$0 sm:$0xff]  ;;  %v1830_v54 = vld [vmem:[#allocation2 + $0x1] ss:$0 sm:$0xff]  ;;  %vm427_vm4 = vcmask 1043456   ;;  %s1650_s21 = smov 112  }
  0x6e   :  { %s1651_s22 = smov 48   ;;  %vm1026_vm5 = vcmask 523264  }
  0x70   :  { %v158_v0 = vld [vmem:[%s1987_s28] sm:$0xff]  ;;  %v159_v1 = vld [vmem:[%s1987_s28 + $0x8] sm:$0xff]  ;;  %1284 = vmatpush3.bf16.msra.mxu0 %v1399_v16 }
  0x71   :  { %v165_v2 = vsel %vm164_vm0, %v158_v0, 0.0  ;;  %v168_v3 = vsel %vm164_vm0, %v159_v1, 0.0  ;;  %1295 = vmatprep.subr.bf16.mxu0 %v1646_v15 }
  0x72   :  { %166 = vadd.xlane.f32.xlu0 %v165_v2 }
  0x76   :  { %169 = vadd.xlane.f32.xlu0 %v168_v3 }
  0xfb   :  { %v167_v4 = vpop.xlane.xlu0 %166 }
  0xfc   :  { %v172_v5 = vmul.f32 0.03125, %v167_v4 }
  0xfe   :  { %v174_v6 = vsub.f32 %v158_v0, %v172_v5 }
  0xff   :  { %v170_v7 = vpop.xlane.xlu0 %169 }
 0x100   :  { %v173_v8 = vmul.f32 0.03125, %v170_v7  ;;  %v176_v9 = vmul.f32 %v174_v6, %v174_v6 }
 0x102   :  { %v175_v10 = vsub.f32 %v159_v1, %v173_v8  ;;  %v178_v11 = vsel %vm164_vm0, %v176_v9, 0.0 }
 0x103   :  { %179 = vadd.xlane.f32.xlu1 %v178_v11 }
 0x104   :  { %v177_v12 = vmul.f32 %v175_v10, %v175_v10 }
 0x106   :  { %v181_v13 = vsel %vm164_vm0, %v177_v12, 0.0 }
 0x107   :  { %182 = vadd.xlane.f32.xlu1 %v181_v13 }
 0x18c   :  { %v180_v17 = vpop.xlane.xlu1 %179 }
 0x18d   :  { %v184_v18 = vmul.f32 0.03125, %v180_v17 }
 0x18f   :  { %v186_v19 = vadd.f32 1e-12, %v184_v18 }
 0x190   :  { %v183_v20 = vpop.xlane.xlu1 %182 }
 0x191   :  { %1410 = vrsqrt.f32 %v186_v19  ;;  %v185_v21 = vmul.f32 0.03125, %v183_v20 }
 0x193   :  { %v187_v22 = vadd.f32 1e-12, %v185_v21 }
 0x195   :  { %1412 = vrsqrt.f32 %v187_v22 }
 0x19e   :  { %v1411_v23 = vpop.eup %1410 }
 0x19f   :  { %v190_v24 = vmul.f32 %v1411_v23, %v174_v6 }
 0x1a1   :  { %v198_v28 = vmul.f32 %v1208_v25, %v190_v24 }
 0x1a2   :  { %v1413_v26 = vpop.eup %1412 }
 0x1a3   :  { %v191_v27 = vmul.f32 %v1413_v26, %v175_v10  ;;  %v1800_v31 = vadd.f32 %v1209_v29, %v198_v28 }
 0x1a5   :  { %v199_v30 = vmul.f32 %v1208_v25, %v191_v27 }
 0x1a7   :  { %v1802_v32 = vadd.f32 %v1209_v29, %v199_v30 }
 0x1a9   :  { %v212_v33 = vpack.c.bf16 %v1802_v32, %v1800_v31 }
 0x1ab   :  { %1286 = vmatmul.mubr.msk.bf16.vlgmr.msra.gmra.mxu0 %vm164_vm0, %v212_v33 }
 0x1ac   :  { %1297 = vmatprep.mubr.msk.bf16.mxu0 %vm1647_vm1, %v1646_v15 }
 0x26b   :  { %v269_v35 = vpop.f32.mrf.mxu0 }
 0x26c   :  { %v270_v36 = vadd.f32 %v1210_v34, %v269_v35 }
 0x26d   :  { %v1287_v37 = vpop.f32.mrf.mxu0 }
 0x26e   :  { %v1809_v38 = vpack.c.bf16 %v270_v36, %v270_v36 }
 0x26f   :  { %v272_v39 = vpop.f32.mrf.mxu0 }
 0x270   :  { %v273_v40 = vadd.f32 %v1210_v34, %v272_v39  ;;  %283 = vrot.lane.b32.xlu0 %v1809_v38, %s1648_s4 }
 0x271   :  { %v1288_v41 = vpop.f32.mrf.mxu0 }
 0x272   :  { %v1812_v42 = vpack.c.bf16 %v273_v40, %v273_v40 }
 0x274   :  { %333 = vrot.lane.b32.xlu1 %v1812_v42, %s1648_s4 }
 0x2e2   :  { %v284_v43 = vpop.permute.xlu0 %283 }
 0x2e3   :  { %v290_v44 = vsel %vm285_vm2, %v284_v43, 0 }
 0x2e4   :  { %1290 = vmatpush3.bf16.xpose.msra.mxu1 %v290_v44 }
 0x2e5   :  { %1301 = vmatprep.subr.bf16.mxu1 %v1646_v15 }
 0x2e6   :  { %v334_v45 = vpop.permute.xlu1 %333 }
 0x2e7   :  { %v339_v46 = vsel %vm285_vm2, %v334_v45, 0 }
 0x2e8   :  { %1296 = vmatpush3.bf16.xpose.msra.mxu0 %v339_v46 }
 0x2e9   :  { %1307 = vmatprep.subr.bf16.mxu0 %v1646_v15 }
 0x2eb   :  { %1292 = vmatmul.mubr.msk.bf16.vlgmr.msra.gmra.mxu1 %vm285_vm2, %v1809_v38 }
 0x2ec   :  { %1303 = vmatprep.mubr.msk.bf16.mxu1 %vm1647_vm1, %v1646_v15 }
 0x2ef   :  { %1298 = vmatmul.mubr.msk.bf16.vlgmr.msra.gmra.mxu0 %vm285_vm2, %v1812_v42 }
 0x2f0   :  { %1309 = vmatprep.mubr.msk.bf16.mxu0 %vm1647_vm1, %v1646_v15 }
 0x3ab   :  { %v326_v47 = vpop.f32.mrf.mxu1 }
 0x3ac   :  { %v381_v49 = vmul.f32 0.25, %v326_v47 }
 0x3ad   :  { %v1293_v50 = vpop.f32.mrf.mxu1 }
 0x3ae   :  { %v395_v51 = vadd.f32 %v1827_v48, %v381_v49 }
 0x3af   :  { %v329_v52 = vpop.f32.mrf.mxu1  ;;  %v375_v53 = vpop.f32.mrf.mxu0 }
 0x3b0   :  { %v382_v55 = vmul.f32 0.25, %v375_v53  ;;  %v398_v56 = vsel %vm397_vm3, %v395_v51, -inf }
 0x3b1   :  { %v1294_v57 = vpop.f32.mrf.mxu1  ;;  %399 = vmax.xlane.f32.xlu1 %v398_v56  ;;  %v1299_v58 = vpop.f32.mrf.mxu0 }
 0x3b2   :  { %v396_v59 = vadd.f32 %v1830_v54, %v382_v55 }
 0x3b3   :  { %v378_v60 = vpop.f32.mrf.mxu0 }
 0x3b4   :  { %v401_v61 = vsel %vm397_vm3, %v396_v59, -inf }
 0x3b5   :  { %402 = vmax.xlane.f32.xlu0 %v401_v61  ;;  %v1300_v62 = vpop.f32.mrf.mxu0 }
 0x3c2   :  { %471 = vrot.lane.b32.xlu1 %v1812_v42, %s1644_s7 }
 0x3c6   :  { %522 = vrot.lane.b32.xlu1 %v1809_v38, %s1649_s30 }
 0x43a   :  { %v400_v63 = vpop.xlane.xlu1 %399 }
 0x43b   :  { %v404_v0 = vsub.f32 %v395_v51, %v400_v63 }
 0x43d   :  { %v406_v1 = vmul.f32 1.442695, %v404_v0 }
 0x43e   :  { %v472_v2 = vpop.permute.xlu1 %471  ;;  %v403_v3 = vpop.xlane.xlu0 %402 }
 0x43f   :  { %1414 = vpow2.f32 %v406_v1  ;;  %v477_v4 = vsel %vm427_vm4, %v472_v2, 0  ;;  %v405_v5 = vsub.f32 %v396_v59, %v403_v3 }
 0x440   :  { %1308 = vmatpush3.bf16.msra.mxu0 %v477_v4 }
 0x441   :  { %v408_v6 = vmul.f32 1.442695, %v405_v5  ;;  %1319 = vmatprep.subr.bf16.mxu0 %v1646_v15 }
 0x442   :  { %v523_v11 = vpop.permute.xlu1 %522 }
 0x443   :  { %1416 = vpow2.f32 %v408_v6  ;;  %v528_v21 = vsel %vm285_vm2, %v523_v11, 0 }
 0x44c   :  { %v1415_v7 = vpop.eup %1414 }
 0x44d   :  { %v410_v8 = vsel %vm397_vm3, %v1415_v7, 0.0 }
 0x44e   :  { %411 = vadd.xlane.f32.xlu0 %v410_v8 }
 0x450   :  { %v1417_v9 = vpop.eup %1416 }
 0x451   :  { %v413_v10 = vsel %vm397_vm3, %v1417_v9, 0.0 }
 0x452   :  { %414 = vadd.xlane.f32.xlu1 %v413_v10 }
 0x463   :  { %572 = vrot.lane.b32.xlu1 %v1812_v42, %s1649_s30 }
 0x464   :  { %422 = vrot.lane.b32.xlu0 %v1809_v38, %s1644_s7 }
 0x467   :  { %570 = vrot.lane.b32.xlu1 %v1812_v42, %s1650_s21 }
 0x468   :  { %520 = vrot.lane.b32.xlu0 %v1809_v38, %s1650_s21 }
 0x4d7   :  { %v412_v12 = vpop.xlane.xlu0 %411 }
 0x4d8   :  { %1418 = vrcp.f32 %v412_v12  ;;  %v1401_v12 = vld [vmem:[%s1968_s6 + $0x8] sm:$0xff]  }
 0x4db   :  { %v415_v13 = vpop.xlane.xlu1 %414  ;;  %v423_v14 = vpop.permute.xlu0 %422 }
 0x4dc   :  { %1420 = vrcp.f32 %v415_v13  ;;  %v429_v16 = vsel %vm427_vm4, %v423_v14, 0 }
 0x4dd   :  { %1302 = vmatpush3.bf16.msra.mxu1 %v429_v16 }
 0x4de   :  { %1313 = vmatprep.subr.bf16.mxu1 %v1646_v15 }
 0x4df   :  { %v573_v23 = vpop.permute.xlu1 %572  ;;  %v521_v26 = vpop.permute.xlu0 %520 }
 0x4e0   :  { %v578_v25 = vsel %vm285_vm2, %v573_v23, 0 }
 0x4e3   :  { %v571_v27 = vpop.permute.xlu1 %570 }
 0x4e5   :  { %v1419_v17 = vpop.eup %1418 }
 0x4e6   :  { %v418_v18 = vmul.f32 %v1419_v17, %v1415_v7 }
 0x4e8   :  { %v420_v19 = vpack.c.bf16 %v418_v18, %v418_v18 }
 0x4e9   :  { %v1421_v20 = vpop.eup %1420 }
 0x4ea   :  { %1304 = vmatmul.mubr.msk.bf16.vlgmr.msra.gmra.mxu1 %vm397_vm3, %v420_v19  ;;  %v419_v22 = vmul.f32 %v1421_v20, %v1417_v9 }
 0x4eb   :  { %1314 = vmatpush3.bf16.xpose.msra.mxu1 %v528_v21  ;;  %1315 = vmatprep.mubr.msk.bf16.mxu1 %vm1647_vm1, %v1646_v15 }
 0x4ec   :  { %v421_v24 = vpack.c.bf16 %v419_v22, %v419_v22  ;;  %1325 = vmatprep.subr.bf16.mxu1 %v1646_v15 }
 0x4ee   :  { %1310 = vmatmul.mubr.msk.bf16.vlgmr.msra.gmra.mxu0 %vm397_vm3, %v421_v24 }
 0x4ef   :  { %1320 = vmatpush3.bf16.xpose.msra.mxu0 %v578_v25  ;;  %1321 = vmatprep.mubr.msk.bf16.mxu0 %vm1647_vm1, %v1646_v15 }
 0x4f0   :  { %1331 = vmatprep.subr.bf16.mxu0 %v1646_v15 }
 0x4f2   :  { %1316 = vmatmul.mubr.msk.bf16.vlgmr.msra.gmra.mxu1 %vm285_vm2, %v521_v26 }
 0x4f3   :  { %1327 = vmatprep.mubr.msk.bf16.mxu1 %vm1647_vm1, %v1646_v15 }
 0x4f6   :  { %1322 = vmatmul.mubr.msk.bf16.vlgmr.msra.gmra.mxu0 %vm285_vm2, %v571_v27 }
 0x4f7   :  { %1333 = vmatprep.mubr.msk.bf16.mxu0 %vm1647_vm1, %v1646_v15 }
 0x5aa   :  { %v1865_v28 = vpop.f32.mrf.mxu1 }
 0x5ac   :  { %v1305_v29 = vpop.f32.mrf.mxu1 }
 0x5ae   :  { %v468_v30 = vpop.f32.mrf.mxu1  ;;  %v1867_v33 = vpop.f32.mrf.mxu0 }
 0x5af   :  { %v519_v34 = vpack.c.bf16 %v1867_v33, %v1865_v28  ;;  %v1228_v28 = vld [vmem:[#allocation10] ss:$0 sm:$0xff] }
 0x5b0   :  { %v1306_v35 = vpop.f32.mrf.mxu1  ;;  %v1311_v36 = vpop.f32.mrf.mxu0 }
 0x5b2   :  { %v516_v37 = vpop.f32.mrf.mxu0  ;;  %v564_v39 = vpop.f32.mrf.mxu1 }
 0x5b3   :  { %v620_v40 = vmul.f32 0.25, %v564_v39 }
 0x5b4   :  { %v1312_v41 = vpop.f32.mrf.mxu0  ;;  %v1317_v43 = vpop.f32.mrf.mxu1 }
 0x5b5   :  { %v622_v44 = vadd.f32 %v1827_v48, %v620_v40 }
 0x5b6   :  { %v567_v45 = vpop.f32.mrf.mxu1  ;;  %v614_v46 = vpop.f32.mrf.mxu0 }
 0x5b7   :  { %v621_v47 = vmul.f32 0.25, %v614_v46  ;;  %v624_v49 = vsel %vm397_vm3, %v622_v44, -inf }
 0x5b8   :  { %625 = vmax.xlane.f32.xlu0 %v624_v49  ;;  %v1318_v50 = vpop.f32.mrf.mxu1  ;;  %v1323_v51 = vpop.f32.mrf.mxu0 }
 0x5b9   :  { %v623_v52 = vadd.f32 %v1830_v54, %v621_v47 }
 0x5ba   :  { %v617_v53 = vpop.f32.mrf.mxu0 }
 0x5bb   :  { %v627_v55 = vsel %vm397_vm3, %v623_v52, -inf }
 0x5bc   :  { %628 = vmax.xlane.f32.xlu1 %v627_v55  ;;  %v1324_v56 = vpop.f32.mrf.mxu0  ;;  %v1403_v55 = vld [vmem:[%s1972_s10] sm:$0xff]  }
 0x5cd   :  { %696 = vrot.lane.b32.xlu1 %v1812_v42, %s1651_s22 }
 0x641   :  { %v626_v57 = vpop.xlane.xlu0 %625 }
 0x642   :  { %v630_v48 = vsub.f32 %v622_v44, %v626_v57 }
 0x644   :  { %v632_v58 = vmul.f32 1.442695, %v630_v48 }
 0x645   :  { %v629_v59 = vpop.xlane.xlu1 %628 }
 0x646   :  { %1422 = vpow2.f32 %v632_v58  ;;  %v631_v60 = vsub.f32 %v623_v52, %v629_v59 }
 0x648   :  { %v634_v61 = vmul.f32 1.442695, %v631_v60 }
 0x649   :  { %v697_v62 = vpop.permute.xlu1 %696 }
 0x64a   :  { %1424 = vpow2.f32 %v634_v61  ;;  %v702_v63 = vsel %vm427_vm4, %v697_v62, 0 }
 0x64b   :  { %1332 = vmatpush3.bf16.msra.mxu0 %v702_v63  ;;  %v1229_v63 = vld [vmem:[#allocation11] ss:$0 sm:$0xff] }
 0x64c   :  { %1343 = vmatprep.subr.bf16.mxu0 %v1646_v15 }
 0x653   :  { %v1423_v54 = vpop.eup %1422 }
 0x654   :  { %v636_v0 = vsel %vm397_vm3, %v1423_v54, 0.0 }
 0x655   :  { %637 = vadd.xlane.f32.xlu0 %v636_v0 }
 0x657   :  { %v1425_v1 = vpop.eup %1424 }
 0x658   :  { %v639_v42 = vsel %vm397_vm3, %v1425_v1, 0.0 }
 0x659   :  { %640 = vadd.xlane.f32.xlu0 %v639_v42  ;;  %v1230_v42 = vld [vmem:[#allocation13] ss:$0 sm:$0xff] }
 0x66f   :  { %648 = vrot.lane.b32.xlu0 %v1809_v38, %s1651_s22  ;;  %v1400_v38 = vld [vmem:[%s1968_s6] sm:$0xff]  }
 0x6de   :  { %v638_v2 = vpop.xlane.xlu0 %637 }
 0x6df   :  { %1426 = vrcp.f32 %v638_v2 }
 0x6e2   :  { %v641_v3 = vpop.xlane.xlu0 %640 }
 0x6e3   :  { %1428 = vrcp.f32 %v641_v3 }
 0x6e6   :  { %v649_v4 = vpop.permute.xlu0 %648 }
 0x6e7   :  { %v654_v5 = vsel %vm427_vm4, %v649_v4, 0 }
 0x6e8   :  { %1326 = vmatpush3.bf16.msra.mxu1 %v654_v5 }
 0x6e9   :  { %1337 = vmatprep.subr.bf16.mxu1 %v1646_v15 }
 0x6ec   :  { %v1427_v6 = vpop.eup %1426 }
 0x6ed   :  { %v644_v7 = vmul.f32 %v1427_v6, %v1423_v54  ;;  %v1404_v6 = vld [vmem:[%s1974_s12 + $0x18] sm:$0xff]  }
 0x6ef   :  { %v646_v8 = vpack.c.bf16 %v644_v7, %v644_v7  ;;  %v1405_v7 = vld [vmem:[%s1974_s12 + $0x10] sm:$0xff]  }
 0x6f0   :  { %v1429_v9 = vpop.eup %1428 }
 0x6f1   :  { %1328 = vmatmul.mubr.msk.bf16.vlgmr.msra.gmra.mxu1 %vm397_vm3, %v646_v8  ;;  %v645_v10 = vmul.f32 %v1429_v9, %v1425_v1  ;;  %v1406_v8 = vld [vmem:[%s1974_s12 + $0x8] sm:$0xff]   ;;  %v1407_v9 = vld [vmem:[%s1974_s12] sm:$0xff]  }
 0x6f2   :  { %1339 = vmatprep.mubr.msk.bf16.mxu1 %vm1647_vm1, %v1646_v15  ;;  %1338 = vmatpush3.bf16.msra.mxu1 %v1401_v12 }
 0x6f3   :  { %v647_v11 = vpack.c.bf16 %v645_v10, %v645_v10  ;;  %1349 = vmatprep.subr.bf16.mxu1 %v1646_v15  ;;  %v1231_v10 = vld [vmem:[%s1973_s11] ss:$0 sm:$0xff] }
 0x6f5   :  { %1334 = vmatmul.mubr.msk.bf16.vlgmr.msra.gmra.mxu0 %vm397_vm3, %v647_v11 }
 0x6f6   :  { %1344 = vmatpush3.bf16.msra.mxu0 %v1400_v38  ;;  %1345 = vmatprep.mubr.msk.bf16.mxu0 %vm1647_vm1, %v1646_v15 }
 0x6f7   :  { %1357 = vmatprep.subr.bf16.mxu0 %v1646_v15 }
 0x6fd   :  { %1346 = vmatmul.mubr.msk.bf16.vlgmr.msra.gmra.mxu0 %vm285_vm2, %v519_v34 }
 0x6fe   :  { %1365 = vmatprep.mubr.msk.bf16.mxu0 %vm1647_vm1, %v1646_v15  ;;  %1358 = vmatpush3.bf16.msra.mxu0 %v1404_v6 }
 0x6ff   :  { %1359 = vmatprep.subr.bf16.mxu0 %v1646_v15 }
 0x702   :  { %1360 = vmatpush3.bf16.msra.mxu0 %v1405_v7 }
 0x703   :  { %1361 = vmatprep.subr.bf16.mxu0 %v1646_v15 }
 0x706   :  { %1362 = vmatpush3.bf16.msra.mxu0 %v1406_v8 }
 0x707   :  { %1363 = vmatprep.subr.bf16.mxu0 %v1646_v15 }
 0x70a   :  { %1364 = vmatpush3.bf16.msra.mxu0 %v1407_v9 }
 0x7b1   :  { %v690_v13 = vpop.f32.mrf.mxu1 }
 0x7b3   :  { %v1329_v14 = vpop.f32.mrf.mxu1 }
 0x7b5   :  { %v693_v16 = vpop.f32.mrf.mxu1  ;;  %v738_v17 = vpop.f32.mrf.mxu0 }
 0x7b6   :  { %v744_v18 = vpack.c.bf16 %v738_v17, %v690_v13 }
 0x7b7   :  { %v1330_v19 = vpop.f32.mrf.mxu1  ;;  %v1335_v20 = vpop.f32.mrf.mxu0 }
 0x7b8   :  { %1340 = vmatmul.mubr.msk.bf16.vlgmr.msra.gmra.mxu1 %vm285_vm2, %v744_v18 }
 0x7b9   :  { %v741_v21 = vpop.f32.mrf.mxu0  ;;  %1353 = vmatprep.mubr.msk.bf16.mxu1 %vm1647_vm1, %v1646_v15 }
 0x7bb   :  { %v1336_v22 = vpop.f32.mrf.mxu0 }
 0x7bd   :  { %v838_v23 = vpop.f32.mrf.mxu0 }
 0x7bf   :  { %v1347_v24 = vpop.f32.mrf.mxu0 }
 0x7c1   :  { %v841_v25 = vpop.f32.mrf.mxu0 }
 0x7c3   :  { %v1348_v26 = vpop.f32.mrf.mxu0 }
 0x878   :  { %v788_v27 = vpop.f32.mrf.mxu1 }
 0x879   :  { %v839_v29 = vadd.f32 %v838_v23, %v788_v27 }
 0x87a   :  { %v1341_v30 = vpop.f32.mrf.mxu1 }
 0x87b   :  { %v852_v33 = vadd.f32 %v1228_v28, %v839_v29 }
 0x87c   :  { %v791_v34 = vpop.f32.mrf.mxu1 }
 0x87d   :  { %v842_v35 = vadd.f32 %v841_v25, %v791_v34  ;;  %v854_v36 = vadd.f32 %v852_v33, %v1800_v31 }
 0x87e   :  { %v1342_v37 = vpop.f32.mrf.mxu1 }
 0x87f   :  { %v853_v39 = vadd.f32 %v1228_v28, %v842_v35  ;;  %v858_v40 = vsel %vm164_vm0, %v854_v36, 0.0 }
 0x880   :  { %859 = vadd.xlane.f32.xlu1 %v858_v40 }
 0x881   :  { %v855_v41 = vadd.f32 %v853_v39, %v1802_v32  ;;  %v1402_v32 = vld [vmem:[%s1972_s10 + $0x8] sm:$0xff]   ;;  %v1235_v39 = vld [vmem:[%s1975_s13] ss:$0 sm:$0xff] }
 0x882   :  { %1350 = vmatpush3.bf16.msra.mxu1 %v1402_v32 }
 0x883   :  { %v861_v43 = vsel %vm164_vm0, %v855_v41, 0.0  ;;  %1351 = vmatprep.subr.bf16.mxu1 %v1646_v15 }
 0x884   :  { %862 = vadd.xlane.f32.xlu0 %v861_v43 }
 0x886   :  { %1352 = vmatpush3.bf16.msra.mxu1 %v1403_v55 }
 0x887   :  { %1369 = vmatprep.subr.bf16.mxu1 %v1646_v15 }
 0x909   :  { %v860_v44 = vpop.xlane.xlu1 %859 }
 0x90a   :  { %v864_v45 = vmul.f32 0.03125, %v860_v44 }
 0x90c   :  { %v866_v46 = vsub.f32 %v854_v36, %v864_v45 }
 0x90d   :  { %v863_v47 = vpop.xlane.xlu0 %862 }
 0x90e   :  { %v865_v49 = vmul.f32 0.03125, %v863_v47  ;;  %v868_v50 = vmul.f32 %v866_v46, %v866_v46 }
 0x910   :  { %v867_v51 = vsub.f32 %v855_v41, %v865_v49  ;;  %v870_v52 = vsel %vm164_vm0, %v868_v50, 0.0 }
 0x911   :  { %871 = vadd.xlane.f32.xlu0 %v870_v52 }
 0x912   :  { %v869_v31 = vmul.f32 %v867_v51, %v867_v51 }
 0x914   :  { %v873_v53 = vsel %vm164_vm0, %v869_v31, 0.0 }
 0x915   :  { %874 = vadd.xlane.f32.xlu1 %v873_v53 }
 0x99a   :  { %v872_v56 = vpop.xlane.xlu0 %871 }
 0x99b   :  { %v876_v57 = vmul.f32 0.03125, %v872_v56 }
 0x99d   :  { %v878_v48 = vadd.f32 1e-12, %v876_v57 }
 0x99e   :  { %v875_v58 = vpop.xlane.xlu1 %874 }
 0x99f   :  { %1430 = vrsqrt.f32 %v878_v48  ;;  %v877_v59 = vmul.f32 0.03125, %v875_v58 }
 0x9a1   :  { %v879_v60 = vadd.f32 1e-12, %v877_v59 }
 0x9a3   :  { %1432 = vrsqrt.f32 %v879_v60  ;;  %v1408_v60 = vld [vmem:[#allocation14 + $0x8] sm:$0xff]  }
 0x9ac   :  { %v1431_v61 = vpop.eup %1430 }
 0x9ad   :  { %v882_v62 = vmul.f32 %v1431_v61, %v866_v46  ;;  %v1409_v61 = vld [vmem:[#allocation14] sm:$0xff]  }
 0x9af   :  { %v890_v1 = vmul.f32 %v1229_v63, %v882_v62 }
 0x9b0   :  { %v1433_v54 = vpop.eup %1432 }
 0x9b1   :  { %v883_v0 = vmul.f32 %v1433_v54, %v867_v51  ;;  %v898_v3 = vadd.f32 %v1230_v42, %v890_v1 }
 0x9b3   :  { %v891_v2 = vmul.f32 %v1229_v63, %v883_v0 }
 0x9b5   :  { %v899_v4 = vadd.f32 %v1230_v42, %v891_v2 }
 0x9b7   :  { %v904_v5 = vpack.c.bf16 %v899_v4, %v898_v3 }
 0x9b9   :  { %1354 = vmatmul.mubr.msk.bf16.vlgmr.msra.gmra.mxu1 %vm164_vm0, %v904_v5 }
 0x9ba   :  { %1373 = vmatprep.mubr.msk.bf16.mxu1 %vm1647_vm1, %v1646_v15  ;;  %1370 = vmatpush3.bf16.msra.mxu1 %v1408_v60 }
 0x9bb   :  { %1371 = vmatprep.subr.bf16.mxu1 %v1646_v15  ;;  %v1242_v15 = vld [vmem:[%s1977_s15] ss:$0 sm:$0xff] }
 0x9be   :  { %1372 = vmatpush3.bf16.msra.mxu1 %v1409_v61 }
 0xa79   :  { %v961_v38 = vpop.f32.mrf.mxu1 }
 0xa7a   :  { %v962_v11 = vadd.f32 %v1231_v10, %v961_v38 }
 0xa7b   :  { %v1355_v12 = vpop.f32.mrf.mxu1 }
 0xa7c   :  { %v968_v13 = vmul.f32 %v962_v11, %v962_v11 }
 0xa7d   :  { %v964_v14 = vpop.f32.mrf.mxu1 }
 0xa7e   :  { %v970_v16 = vmul.f32 %v968_v13, %v962_v11  ;;  %v965_v17 = vadd.f32 %v1231_v10, %v964_v14 }
 0xa7f   :  { %v1356_v18 = vpop.f32.mrf.mxu1 }
 0xa80   :  { %v972_v19 = vmul.f32 0.044715, %v970_v16  ;;  %v969_v20 = vmul.f32 %v965_v17, %v965_v17 }
 0xa82   :  { %v974_v21 = vadd.f32 %v972_v19, %v962_v11  ;;  %v971_v22 = vmul.f32 %v969_v20, %v965_v17 }
 0xa84   :  { %v976_v23 = vmul.f32 0.7978846, %v974_v21  ;;  %v973_v24 = vmul.f32 0.044715, %v971_v22 }
 0xa86   :  { %1434 = vtanh.f32 %v976_v23  ;;  %v975_v25 = vadd.f32 %v973_v24, %v965_v17 }
 0xa88   :  { %v977_v26 = vmul.f32 0.7978846, %v975_v25 }
 0xa8a   :  { %1436 = vtanh.f32 %v977_v26 }
 0xa93   :  { %v1435_v27 = vpop.eup %1434 }
 0xa94   :  { %v980_v28 = vadd.f32 1.0, %v1435_v27 }
 0xa96   :  { %v982_v30 = vmul.f32 0.5, %v980_v28 }
 0xa97   :  { %v1437_v29 = vpop.eup %1436 }
 0xa98   :  { %v981_v33 = vadd.f32 1.0, %v1437_v29  ;;  %v984_v35 = vmul.f32 %v982_v30, %v962_v11  ;;  %v1243_v11 = vld [vmem:[%s1979_s17] ss:$0 sm:$0xff] }
 0xa9a   :  { %v983_v34 = vmul.f32 0.5, %v981_v33 }
 0xa9c   :  { %v985_v36 = vmul.f32 %v983_v34, %v965_v17 }
 0xa9e   :  { %v994_v37 = vpack.c.bf16 %v985_v36, %v984_v35 }
 0xaa0   :  { %1366 = vmatmul.mubr.msk.bf16.vlgmr.msra.gmra.mxu0 %vm1026_vm5, %v994_v37 }
 0xb60   :  { %v1064_v40 = vpop.f32.mrf.mxu0 }
 0xb61   :  { %v1065_v41 = vadd.f32 %v1235_v39, %v1064_v40 }
 0xb62   :  { %v1367_v43 = vpop.f32.mrf.mxu0 }
 0xb63   :  { %v1071_v44 = vadd.f32 %v1065_v41, %v898_v3 }
 0xb64   :  { %v1067_v45 = vpop.f32.mrf.mxu0 }
 0xb65   :  { %v1068_v46 = vadd.f32 %v1235_v39, %v1067_v45  ;;  %v1075_v47 = vsel %vm164_vm0, %v1071_v44, 0.0 }
 0xb66   :  { %1076 = vadd.xlane.f32.xlu0 %v1075_v47  ;;  %v1368_v49 = vpop.f32.mrf.mxu0 }
 0xb67   :  { %v1072_v50 = vadd.f32 %v1068_v46, %v899_v4  ;;  %v1241_v4 = vld [vmem:[%s1976_s14] ss:$0 sm:$0xff]  ;;  %s1652_s14 = smov [#allocation16]  }
 0xb68   :  { %s1192_s22 = sshll.u32 %s1652_s14, 4  ;;  %s1193_s22 = int_to_ptr.vmem [resolvable:$true] %s1192_s22 }
 0xb69   :  { %v1078_v51 = vsel %vm164_vm0, %v1072_v50, 0.0  ;;  %s1602_s15 = scalar_lea.vmem %s1193_s22, 256  ;;  %p1607_p13 = scmp.lt.s32.totalorder %s1193_s22, %s1193_s22 }
 0xb6a   :  { %1079 = vadd.xlane.f32.xlu1 %v1078_v51  ;;  %p1603_p12 = scmp.ne.s32.totalorder %s1193_s22, %s1602_s15  ;;  %p1608_p0 = scmp.lt.s32.totalorder %s1602_s15, %s1602_s15 }
 0xb6c   :  { %p1609_p1 = por %p1608_p0, %p1607_p13 }
 0xb6e   :  { %p1610_p2 = pnand %p1609_p1, %p1603_p12 }
 0xbef   :  { %v1077_v52 = vpop.xlane.xlu0 %1076 }
 0xbf0   :  { %v1081_v31 = vmul.f32 0.03125, %v1077_v52 }
 0xbf2   :  { %v1083_v53 = vsub.f32 %v1071_v44, %v1081_v31 }
 0xbf3   :  { %v1080_v32 = vpop.xlane.xlu1 %1079 }
 0xbf4   :  { %v1082_v55 = vmul.f32 0.03125, %v1080_v32  ;;  %v1085_v56 = vmul.f32 %v1083_v53, %v1083_v53 }
 0xbf6   :  { %v1084_v57 = vsub.f32 %v1072_v50, %v1082_v55  ;;  %v1087_v48 = vsel %vm164_vm0, %v1085_v56, 0.0 }
 0xbf7   :  { %1088 = vadd.xlane.f32.xlu0 %v1087_v48 }
 0xbf8   :  { %v1086_v58 = vmul.f32 %v1084_v57, %v1084_v57 }
 0xbfa   :  { %v1090_v59 = vsel %vm164_vm0, %v1086_v58, 0.0 }
 0xbfb   :  { %1091 = vadd.xlane.f32.xlu1 %v1090_v59 }
 0xc80   :  { %v1089_v62 = vpop.xlane.xlu0 %1088 }
 0xc81   :  { %v1093_v63 = vmul.f32 0.03125, %v1089_v62 }
 0xc83   :  { %v1095_v54 = vadd.f32 1e-12, %v1093_v63 }
 0xc84   :  { %v1092_v0 = vpop.xlane.xlu1 %1091 }
 0xc85   :  { %1438 = vrsqrt.f32 %v1095_v54  ;;  %v1094_v1 = vmul.f32 0.03125, %v1092_v0 }
 0xc87   :  { %v1096_v42 = vadd.f32 1e-12, %v1094_v1 }
 0xc89   :  { %1440 = vrsqrt.f32 %v1096_v42 }
 0xc92   :  { %v1439_v2 = vpop.eup %1438 }
 0xc93   :  { %v1099_v3 = vmul.f32 %v1439_v2, %v1083_v53 }
 0xc95   :  { %v1107_v7 = vmul.f32 %v1241_v4, %v1099_v3 }
 0xc96   :  { %v1441_v5 = vpop.eup %1440 }
 0xc97   :  { %v1100_v6 = vmul.f32 %v1441_v5, %v1084_v57  ;;  %v1115_v9 = vadd.f32 %v1242_v15, %v1107_v7 }
 0xc99   :  { %v1108_v8 = vmul.f32 %v1241_v4, %v1100_v6 }
 0xc9b   :  { %v1116_v10 = vadd.f32 %v1242_v15, %v1108_v8 }
 0xc9d   :  { %v1121_v38 = vpack.c.bf16 %v1116_v10, %v1115_v9 }
 0xc9f   :  { %1374 = vmatmul.mubr.msk.bf16.vlgmr.msra.gmra.mxu1 %vm164_vm0, %v1121_v38 }
 0xd5f   :  { %v1178_v12 = vpop.f32.mrf.mxu1 }
 0xd60   :  { %v1179_v13 = vadd.f32 %v1243_v11, %v1178_v12 }
 0xd61   :  { %v1375_v14 = vpop.f32.mrf.mxu1 }
 0xd62   :  { %1185 = vst [vmem:[#allocation16] sm:$0xff] %v1179_v13 }
 0xd63   :  { %v1181_v16 = vpop.f32.mrf.mxu1 }
 0xd64   :  { %v1182_v17 = vadd.f32 %v1243_v11, %v1181_v16 }
 0xd65   :  { %v1376_v18 = vpop.f32.mrf.mxu1 }
 0xd66   :  { %1186 = vst [vmem:[#allocation16 + $0x8] sm:$0xff] %v1182_v17 }
 0xd67   :  { %1613 = shalt.err (!%p1610_p2)
}
 0xd68   :  { %s1653_s2 = smov 128   ;;  %s1654_s17 = smov 8  }
 0xd69   :  { %1198 = dma.vmem_to_hbm [thread:$0]  %s1193_s22, 256, %s1980_s18, [#allocation4], %s1653_s2, %s1653_s2, %s1654_s17  }
 0xd6a   :  { %1632 = dma.done.wait [#allocation4], 256  }
 0xd6b   :  { %1633 = vsyncadd [#allocation4], 4294967040 }
 0xd6c   :  { %1202 = vsyncpa [#allocation3], 1 }
 0xd6d   :  { %1203 = vsyncpa [#allocation6], 1 }
 0xd6e   :  { %1204 = vsyncpa [#allocation9], 1 }
 0xd6f   :  { %1205 = vsyncpa [#allocation12], 1 }
 0xd70   :  { %1206 = vsyncpa [#allocation15], 1 }
 0xd71   :  { %1207 = vsyncpa [#allocation4], 1 }

</bundles_post_ra>
